<compile_context>
chip_gen: v7x
topology: tpu7x:2x2x1
jax: 0.10.0
libtpu: 0.0.40
codegen_flags: <defaults>
</compile_context>

<pallas_src>
import jax
import jax.numpy as jnp
from jax.experimental import pallas as pl
from jax.experimental.pallas import tpu as pltpu


def _round_up(n, m):
    return ((n + m - 1) // m) * m


def _pad2d(a, rows, cols):
    r, c = a.shape
    if r == rows and c == cols:
        return a
    return jnp.pad(a, ((0, rows - r), (0, cols - c)))


def _vmem_budget_bytes():
    """~75% of this chip's per-core VMEM (fallback 48 MiB: safe even on v7x)."""
    try:
        cap = int(pltpu.get_tpu_info().vmem_capacity_bytes)
    except Exception:
        cap = 64 << 20
    return (cap * 3) // 4


def _step_vmem_bytes(tm, k_pad, h_pad, n_pad):
    act = 3 * 2 * tm * k_pad * 2                       # x,y,z bf16, double-buffered
    out = 2 * tm * n_pad * 2                           # bf16 output, double-buffered
    wts = (k_pad * h_pad + h_pad * n_pad) * 2 \
        + (h_pad + n_pad) * 4                          # single-buffered weights/biases
    tmp = tm * (k_pad + h_pad + n_pad) * 4             # f32 intermediates headroom
    return act + out + wts + tmp


def _choose_tm(batch, tm_target, k_pad, h_pad, n_pad, budget):
    b8 = _round_up(max(batch, 1), 8)
    tm = min(_round_up(tm_target, 8), b8)
    # >= 2 batch tiles whenever the batch allows: lets the "parallel" axis span
    # both v7x TensorCores (harmless 2-step grid on single-TC v5e/v6e).
    if batch > 8 and pl.cdiv(b8, tm) < 2:
        tm = _round_up(pl.cdiv(b8, 2), 8)
    # Shrink until the per-step footprint fits the VMEM budget.
    while tm > 8 and _step_vmem_bytes(tm, k_pad, h_pad, n_pad) > budget:
        tm = max(8, _round_up(tm // 2, 8))
    return tm


def _mlp_kernel(x_ref, y_ref, z_ref, w1_ref, b1_ref, w2_ref, b2_ref, out_ref):
    # torch.sum(torch.stack([x, y, z]), dim=0) == x + y + z.
    # Inputs arrive as bf16 tiles; sum in f32 on the VPU.
    inp = (x_ref[...].astype(jnp.float32)
           + y_ref[...].astype(jnp.float32)
           + z_ref[...].astype(jnp.float32))
    # fc1 (bf16 MXU, f32 accumulate) + bias + ReLU (f32 VPU).
    h = jnp.dot(inp.astype(jnp.bfloat16), w1_ref[...],
                preferred_element_type=jnp.float32)
    h = jnp.maximum(h + b1_ref[...], 0.0)
    # fc2 (bf16 MXU, f32 accumulate) + bias.
    o = jnp.dot(h.astype(jnp.bfloat16), w2_ref[...],
                preferred_element_type=jnp.float32)
    out_ref[...] = (o + b2_ref[...]).astype(out_ref.dtype)


def prepare_params(w1, b1, w2, b2):
    """Pad feature dims to 128-lane multiples and cast weights to bf16 ONCE.

    w1: (input_size, hidden), b1: (hidden,), w2: (hidden, classes), b2: (classes,).
    (PyTorch Linear stores (out, in); pass the transpose so the kernel does
    plain row-major matmuls with no in-kernel transpose.)
    """
    in_features, hidden = w1.shape
    num_classes = w2.shape[1]
    k_pad = _round_up(in_features, 128)
    h_pad = _round_up(hidden, 128)
    n_pad = _round_up(num_classes, 128)
    return {
        "w1": _pad2d(w1, k_pad, h_pad).astype(jnp.bfloat16),
        "b1": _pad2d(b1.reshape(1, -1).astype(jnp.float32), 1, h_pad),
        "w2": _pad2d(w2, h_pad, n_pad).astype(jnp.bfloat16),
        "b2": _pad2d(b2.reshape(1, -1).astype(jnp.float32), 1, n_pad),
        "in_features": in_features,
        "num_classes": num_classes,
    }


def mlp_forward(x, y, z, params, *, tm=512):
    """x, y, z: (batch, input_size) f32.  Returns (batch, num_classes) f32."""
    batch, in_features = x.shape
    assert in_features == params["in_features"]
    w1p, b1p, w2p, b2p = params["w1"], params["b1"], params["w2"], params["b2"]
    num_classes = params["num_classes"]
    k_pad, h_pad = w1p.shape
    n_pad = w2p.shape[1]

    budget = _vmem_budget_bytes()
    tm_eff = _choose_tm(batch, tm, k_pad, h_pad, n_pad, budget)
    grid = (pl.cdiv(batch, tm_eff),)      # partial last tile handled by Pallas

    # Stream activations as bf16: halves the dominant HBM read traffic and the
    # MXU consumes bf16 anyway (within existing tolerance).
    def prep(a):
        return _pad2d(a, batch, k_pad).astype(jnp.bfloat16)

    xp, yp, zp = prep(x), prep(y), prep(z)

    act_spec = pl.BlockSpec((tm_eff, k_pad), lambda i: (i, 0))

    def resident(shape):
        # Grid-invariant operands: VMEM-resident, single-buffered (no 2x copy).
        return pl.BlockSpec(shape, lambda i: (0, 0), pipeline_mode=pl.Buffered(1))

    out = pl.pallas_call(
        _mlp_kernel,
        out_shape=jax.ShapeDtypeStruct((batch, n_pad), jnp.bfloat16),
        grid=grid,
        in_specs=[
            act_spec, act_spec, act_spec,           # x, y, z tiles (pipelined)
            resident((k_pad, h_pad)),               # w1
            resident((1, h_pad)),                   # b1
            resident((h_pad, n_pad)),               # w2
            resident((1, n_pad)),                   # b2
        ],
        out_specs=pl.BlockSpec((tm_eff, n_pad), lambda i: (i, 0)),
        compiler_params=pltpu.CompilerParams(
            dimension_semantics=("parallel",),      # shard batch tiles on v7x's 2 TCs
            vmem_limit_bytes=budget,
        ),
    )(xp, yp, zp, w1p, b1p, w2p, b2p)

    return out[:, :num_classes].astype(jnp.float32)


def _ref_forward(x, y, z, w1, b1, w2, b2):
    inp = x + y + z
    h = jnp.maximum(inp @ w1 + b1, 0.0)
    return h @ w2 + b2


if __name__ == "__main__":
    batch, input_size, hidden_size, num_classes = 256, 128, 128, 16

    key = jax.random.PRNGKey(0)
    kx, ky, kz, kw1, kb1, kw2, kb2 = jax.random.split(key, 7)

    x = jax.random.normal(kx, (batch, input_size), jnp.float32)
    y = jax.random.normal(ky, (batch, input_size), jnp.float32)
    z = jax.random.normal(kz, (batch, input_size), jnp.float32)

    # Deterministic parameter init; weights stored as (in, out) = Linear.weight.T
    bound1 = 1.0 / (input_size ** 0.5)
    bound2 = 1.0 / (hidden_size ** 0.5)
    w1 = jax.random.uniform(kw1, (input_size, hidden_size), jnp.float32, -bound1, bound1)
    b1 = jax.random.uniform(kb1, (hidden_size,), jnp.float32, -bound1, bound1)
    w2 = jax.random.uniform(kw2, (hidden_size, num_classes), jnp.float32, -bound2, bound2)
    b2 = jax.random.uniform(kb2, (num_classes,), jnp.float32, -bound2, bound2)

    params = prepare_params(w1, b1, w2, b2)   # pad + bf16-cast weights once

    # Default tm=512 is auto-capped to 128 here (2-tile "parallel" grid).
    out = mlp_forward(x, y, z, params)
    out = jax.block_until_ready(out)

    ref = _ref_forward(x, y, z, w1, b1, w2, b2)
    assert out.shape == (batch, num_classes)
    # bf16 activations/MXU/output with f32 accumulation vs f32 reference.
    err = float(jnp.max(jnp.abs(out - ref)))
    assert jnp.allclose(out, ref, atol=1e-1, rtol=5e-2), err
    print("KERNEL_OK")
</pallas_src>

<mosaic_0001>
module attributes {stable_mosaic.version = 11 : i64} {
  func.func @_mlp_kernel(%arg0: i32, %arg1: memref<128x128xbf16, #tpu.memory_space<vmem>>, %arg2: memref<128x128xbf16, #tpu.memory_space<vmem>>, %arg3: memref<128x128xbf16, #tpu.memory_space<vmem>>, %arg4: memref<128x128xbf16, #tpu.memory_space<vmem>>, %arg5: memref<1x128xf32, #tpu.memory_space<vmem>>, %arg6: memref<128x128xbf16, #tpu.memory_space<vmem>>, %arg7: memref<1x128xf32, #tpu.memory_space<vmem>>, %arg8: memref<128x128xbf16, #tpu.memory_space<vmem>>) attributes {dimension_semantics = [#tpu.dimension_semantics<parallel>], iteration_bounds = array<i64: 2>, scalar_prefetch = 0 : i64, scratch_operands = 0 : i64, tpu.core_type = #tpu.core_type<tc>, window_params = [{transform_indices = @transform_0, window_bounds = array<i64: 128, 128>}, {transform_indices = @transform_1, window_bounds = array<i64: 128, 128>}, {transform_indices = @transform_2, window_bounds = array<i64: 128, 128>}, {pipeline_mode = #tpu.pipeline_mode<synchronous>, transform_indices = @transform_3, window_bounds = array<i64: 128, 128>}, {pipeline_mode = #tpu.pipeline_mode<synchronous>, transform_indices = @transform_4, window_bounds = array<i64: 1, 128>}, {pipeline_mode = #tpu.pipeline_mode<synchronous>, transform_indices = @transform_5, window_bounds = array<i64: 128, 128>}, {pipeline_mode = #tpu.pipeline_mode<synchronous>, transform_indices = @transform_6, window_bounds = array<i64: 1, 128>}, {transform_indices = @transform_7, window_bounds = array<i64: 128, 128>}]} {
    %c0 = arith.constant 0 : index
    %c0_0 = arith.constant 0 : index
    %0 = vector.load %arg1[%c0, %c0_0] : memref<128x128xbf16, #tpu.memory_space<vmem>>, vector<128x128xbf16>
    %1 = arith.extf %0 : vector<128x128xbf16> to vector<128x128xf32>
    %c0_1 = arith.constant 0 : index
    %c0_2 = arith.constant 0 : index
    %2 = vector.load %arg2[%c0_1, %c0_2] : memref<128x128xbf16, #tpu.memory_space<vmem>>, vector<128x128xbf16>
    %3 = arith.extf %2 : vector<128x128xbf16> to vector<128x128xf32>
    %4 = arith.addf %1, %3 : vector<128x128xf32>
    %c0_3 = arith.constant 0 : index
    %c0_4 = arith.constant 0 : index
    %5 = vector.load %arg3[%c0_3, %c0_4] : memref<128x128xbf16, #tpu.memory_space<vmem>>, vector<128x128xbf16>
    %6 = arith.extf %5 : vector<128x128xbf16> to vector<128x128xf32>
    %7 = arith.addf %4, %6 : vector<128x128xf32>
    %8 = arith.truncf %7 : vector<128x128xf32> to vector<128x128xbf16>
    %c0_5 = arith.constant 0 : index
    %c0_6 = arith.constant 0 : index
    %9 = vector.load %arg4[%c0_5, %c0_6] : memref<128x128xbf16, #tpu.memory_space<vmem>>, vector<128x128xbf16>
    %cst = arith.constant dense<0.000000e+00> : vector<128x128xf32>
    %10 = tpu.matmul %8, %9, %cst {dimension_numbers = #tpu.dot_dimension_numbers<[1], [0], [0], [1], [0, 0, 1, 1], [], []>} : vector<128x128xbf16>, vector<128x128xbf16>, vector<128x128xf32> -> vector<128x128xf32>
    %c0_7 = arith.constant 0 : index
    %c0_8 = arith.constant 0 : index
    %11 = vector.load %arg5[%c0_7, %c0_8] : memref<1x128xf32, #tpu.memory_space<vmem>>, vector<1x128xf32>
    %12 = vector.broadcast %11 : vector<1x128xf32> to vector<128x128xf32>
    %13 = arith.addf %10, %12 : vector<128x128xf32>
    %cst_9 = arith.constant 0.000000e+00 : f32
    %14 = vector.broadcast %cst_9 : f32 to vector<128x128xf32>
    %15 = arith.maximumf %13, %14 : vector<128x128xf32>
    %16 = arith.truncf %15 : vector<128x128xf32> to vector<128x128xbf16>
    %c0_10 = arith.constant 0 : index
    %c0_11 = arith.constant 0 : index
    %17 = vector.load %arg6[%c0_10, %c0_11] : memref<128x128xbf16, #tpu.memory_space<vmem>>, vector<128x128xbf16>
    %cst_12 = arith.constant dense<0.000000e+00> : vector<128x128xf32>
    %18 = tpu.matmul %16, %17, %cst_12 {dimension_numbers = #tpu.dot_dimension_numbers<[1], [0], [0], [1], [0, 0, 1, 1], [], []>} : vector<128x128xbf16>, vector<128x128xbf16>, vector<128x128xf32> -> vector<128x128xf32>
    %c0_13 = arith.constant 0 : index
    %c0_14 = arith.constant 0 : index
    %19 = vector.load %arg7[%c0_13, %c0_14] : memref<1x128xf32, #tpu.memory_space<vmem>>, vector<1x128xf32>
    %20 = vector.broadcast %19 : vector<1x128xf32> to vector<128x128xf32>
    %21 = arith.addf %18, %20 : vector<128x128xf32>
    %22 = arith.truncf %21 : vector<128x128xf32> to vector<128x128xbf16>
    %c0_15 = arith.constant 0 : index
    %c0_16 = arith.constant 0 : index
    %23 = vector.load %arg8[%c0_15, %c0_16] : memref<128x128xbf16, #tpu.memory_space<vmem>>, vector<128x128xbf16>
    tpu.vector_store %arg8[%c0_15, %c0_16], %22 {strides = array<i32>} : memref<128x128xbf16, #tpu.memory_space<vmem>>, vector<128x128xbf16>,
    return
  }
  func.func @transform_0(%arg0: i32) -> (i32, i32) {
    %c0_i32 = arith.constant 0 : i32
    %c0_i32_0 = arith.constant 0 : i32
    return %arg0, %c0_i32 : i32, i32
  }
  func.func @transform_1(%arg0: i32) -> (i32, i32) {
    %c0_i32 = arith.constant 0 : i32
    %c0_i32_0 = arith.constant 0 : i32
    return %arg0, %c0_i32 : i32, i32
  }
  func.func @transform_2(%arg0: i32) -> (i32, i32) {
    %c0_i32 = arith.constant 0 : i32
    %c0_i32_0 = arith.constant 0 : i32
    return %arg0, %c0_i32 : i32, i32
  }
  func.func @transform_3(%arg0: i32) -> (i32, i32) {
    %c0_i32 = arith.constant 0 : i32
    %c0_i32_0 = arith.constant 0 : i32
    %c0_i32_1 = arith.constant 0 : i32
    return %c0_i32, %c0_i32_0 : i32, i32
  }
  func.func @transform_4(%arg0: i32) -> (i32, i32) {
    %c0_i32 = arith.constant 0 : i32
    %c0_i32_0 = arith.constant 0 : i32
    %c0_i32_1 = arith.constant 0 : i32
    return %c0_i32, %c0_i32_0 : i32, i32
  }
  func.func @transform_5(%arg0: i32) -> (i32, i32) {
    %c0_i32 = arith.constant 0 : i32
    %c0_i32_0 = arith.constant 0 : i32
    %c0_i32_1 = arith.constant 0 : i32
    return %c0_i32, %c0_i32_0 : i32, i32
  }
  func.func @transform_6(%arg0: i32) -> (i32, i32) {
    %c0_i32 = arith.constant 0 : i32
    %c0_i32_0 = arith.constant 0 : i32
    %c0_i32_1 = arith.constant 0 : i32
    return %c0_i32, %c0_i32_0 : i32, i32
  }
  func.func @transform_7(%arg0: i32) -> (i32, i32) {
    %c0_i32 = arith.constant 0 : i32
    %c0_i32_0 = arith.constant 0 : i32
    return %arg0, %c0_i32 : i32, i32
  }
}

</mosaic_0001>

<bundles_post_ra>
// kernel: tpu_custom_call.1
= control target key start
LH: loop header
LB: loop body
LE: loop exit
PB: predicated region body
PF: predicated region fallthrough
CT: control target
= control target key end

     0   :  { %s2218_s0 = inlined_call_operand.hbm [shape: bf16[256,128], index: 0, kind: input, shape index: {}]   ;;  %s2219_s1 = inlined_call_operand.hbm [shape: bf16[256,128], index: 1, kind: input, shape index: {}]   ;;  %s2220_s2 = inlined_call_operand.hbm [shape: bf16[256,128], index: 2, kind: input, shape index: {}]   ;;  %s2221_s3 = inlined_call_operand.hbm [shape: bf16[128,128], index: 3, kind: input, shape index: {}]   ;;  %s2222_s4 = inlined_call_operand.vmem [shape: f32[1,128], index: 4, kind: input, shape index: {}]   ;;  %s2223_s5 = inlined_call_operand.hbm [shape: bf16[128,128], index: 5, kind: input, shape index: {}]   ;;  %s2224_s6 = inlined_call_operand.vmem [shape: f32[1,128], index: 6, kind: input, shape index: {}]   ;;  %s2225_s7 = inlined_call_operand.hbm [shape: bf16[256,128], index: 7, kind: output, shape index: {}]  }
   0x1   :  { %2247 = sst [smem:[#allocation21_spill]] %s2219_s1 }
   0x2   :  { %2248 = sst [smem:[#allocation22_spill]] %s2221_s3 }
   0x3   :  { %12 = vsyncpa [#allocation3], 0 }
   0x4   :  { %14 = vsyncpa [#allocation3 + $0x1], 0 }
   0x5   :  { %15 = vsyncpa [#allocation6], 0 }
   0x6   :  { %17 = vsyncpa [#allocation6 + $0x1], 0 }
   0x7   :  { %18 = vsyncpa [#allocation9], 0 }
   0x8   :  { %19 = vsyncpa [#allocation4], 0 }
   0x9   :  { %21 = vsyncpa [#allocation4 + $0x1], 0  ;;  %s1842_s24 = smov 0   ;;  %s1844_s25 = smov 0  }
   0xa   :  { %s1846_s26 = smov 0   ;;  %s1848_s27 = smov 0  }
   0xb LB: > { %2249 = sst [smem:[#allocation16_spill]] %s1778_s24  ;;  %s1863_s28 = sadd.s32 4294967295, %s1790_s27   ;;  %s1790_s27 = sphi %s1848_s27, %s2284_s27   ;;  %s1786_s26 = sphi %s1846_s26, %s2288_s26   ;;  %s1782_s25 = sphi %s1844_s25, %s2287_s25   ;;  %s1778_s24 = sphi %s1842_s24, %s2286_s24  }
   0xc   : > { %2250 = sst [smem:[#allocation17_spill]] %s1790_s27  ;;  %s1133_s29 = sadd.s32 4294967294, %s1790_s27  }
   0xd   : > { %s1867_s30 = sadd.s32 1, %s1790_s27   ;;  %s34_s8 = sadd.s32 1, %s1786_s26 }
   0xe   : > { %2251 = sst [smem:[#allocation18_spill]] %s1867_s30  ;;  %s31_s9 = ssub.s32 %s1790_s27, %s1867_s30 }
   0xf   : > { %p41_p0 = scmp.ne.s32.totalorder %s1786_s26, %s1782_s25  ;;  %p32_p1 = scmp.eq.s32.totalorder %s31_s9, 0 }
  0x10   : > { %p42_p2 = scmp.eq.s32.totalorder %s1790_s27, 0  ;;  %p47_p3 = scmp.ne.s32.totalorder %s1782_s25, %s1778_s24 }
  0x11   : > { %p2227_p4 = scmp.eq.s32.totalorder %s1863_s28, 0  ;;  %p207_p7 = scmp.eq.s32.totalorder %s1863_s28, 1 }
  0x12   : > { %s1879_s10 = scalar_select %p32_p1, %s1786_s26, %s34_s8  }
  0x13   : > { %p1881_p5 = por %p42_p2, %p41_p0  ;;  %p1887_p6 = por %p2227_p4, %p47_p3 }
  0x14   : > { %2252 = sst [smem:[#allocation19_spill]] %s1879_s10  ;;  %p213_p8 = scmp.eq.s32.totalorder %s1133_s29, 1 }
  0x15   : > { %s2253_s11 = scalar_select %p1881_p5, 1, 0 }
  0x16   : > { %s2254_s12 = scalar_select %p1887_p6, 1, 0 }
  0x17   : > { %p1134_p9 = scmp.ge.s32.totalorder %s1790_s27, 1  ;;  %p220_p10 = scmp.lt.s32.totalorder %s1790_s27, 3 }
  0x18   : > { %p1894_p11 = por %p207_p7, %p41_p0  ;;  %p1898_p12 = por %p213_p8, %p47_p3 }
  0x19   : > { %p1902_p13 = pnand %p1134_p9, %p220_p10  ;;  %s1792_s16 = smov [#allocation8]  }
  0x1a   : > { %s2255_s13 = scalar_select %p1894_p11, 1, 0 }
  0x1b   : > { %s2256_s14 = scalar_select %p1898_p12, 1, 0 }
  0x1c   : > { %s2258_s15 = scalar_select %p1902_p13, 1, 0 }
  0x1d   : > { %2257 = sst [smem:[#allocation20_spill]] %s2256_s14  ;;  %p1489_p1 = pneg %p1902_p13 }
  0x1e   : > { %s232_s17 = sshll.u32 %s1792_s16, 4  ;;  %s2226_s19 = sand.u32 1, %s1786_s26   ;;  %s233_s17 = int_to_ptr.vmem [resolvable:$true] %s232_s17 }
  0x1f   : > { %p1910_p2 = pnand %p1489_p1, %p2227_p4  ;;  %s1919_s20 = sshll.u32 %s2226_s19, 6 }
  0x20   : > { %s2260_s3 = sld [smem:[#allocation22_spill]] }
  0x21   : > { %s2259_s18 = scalar_select %p1910_p2, 1, 0 }
  0x22   : > { %p2237_p8 = pneg %p1910_p2 }
  0x26   : > { %s1570_s23 = scalar_lea.hbm %s2260_s3, 1024 }
  0x27   : > { %p1571_p7 = scmp.ne.s32.totalorder %s2260_s3, %s1570_s23  ;;  %p1577_p1 = scmp.lt.u32.totalorder %s1570_s23, %s2260_s3 }
  0x29   : > { %p1573_p9 = pnand %p2237_p8, %p1571_p7 }
  0x2b   : > { %p1574_p10 = pneg %p1573_p9 }
  0x2d   : > { %p1579_p0 = pnand %p1577_p1, %p1574_p10 }
  0x2f   : > { %1582 = shalt.err (!%p1579_p0)
}
  0x30   : > { %s1583_s19 = scalar_lea.vmem %s233_s17, 1024  ;;  %p1591_p11 = scmp.lt.s32.totalorder %s233_s17, %s233_s17 }
  0x31   : > { %p1584_p4 = scmp.ne.s32.totalorder %s233_s17, %s1583_s19  ;;  %p1592_p6 = scmp.lt.s32.totalorder %s1583_s19, %s1583_s19 }
  0x33   : > { %p1586_p3 = pnand %p1584_p4, %p2237_p8  ;;  %p1593_p13 = por %p1592_p6, %p1591_p11 }
  0x35   : > { %p1587_p12 = pneg %p1586_p3 }
  0x37   : > { %p1594_p5 = pnand %p1593_p13, %p1587_p12 }
  0x39   : > { %1597 = shalt.err (!%p1594_p5)
}
  0x3a   : > { %s2233_s21 = smov 64   ;;  %s2235_s22 = smov 4  }
  0x3b   : > { %1492 = dma.hbm_to_vmem [thread:$0]  (!%p1910_p2), %s2260_s3, 1024, %s233_s17, [#allocation9], %s2233_s21, %s2233_s21, %s2235_s22  }
  0x3c   : > { %s1947_s19 = sshll.u32 %s1790_s27, 10  ;;  %p2261_p4 = scmp.ne.s32.totalorder %s2253_s11, 0 }
  0x3d   : > { %p2262_p5 = scmp.lt.s32.totalorder %s1790_s27, 2  ;;  %s286_s9 = sand.u32 1, %s1790_s27  }
  0x3e   : > { %s2264_s1 = sld [smem:[#allocation21_spill]]  ;;  %s290_s17 = scalar_lea.vmem [#allocation5], %s1919_s20 }
  0x3f   : > { %p1953_p6 = pnand %p2262_p5, %p2261_p4  ;;  %s297_s23 = sshll.u32 %s290_s17, 4  ;;  %s1965_s23 = int_to_ptr.vmem [resolvable:$true] %s297_s23 }
  0x40   : > { %s1967_s11 = scalar_lea.sflag [#allocation6], %s286_s9 }
  0x41   : > { %s2263_s8 = scalar_select %p1953_p6, 1, 0 }
  0x42   : > { %p1973_p12 = pneg %p1953_p6 }
  0x44   : > { %s1962_s30 = scalar_lea.hbm %s2264_s1, %s1947_s19  ;;  %s1603_s22 = scalar_lea.hbm %s2264_s1, 2048 }
  0x45   : > { %s1598_s29 = scalar_lea.hbm %s1962_s30, 1024  ;;  %p1604_p3 = scmp.lt.u32.totalorder %s1962_s30, %s2264_s1 }
  0x46   : > { %p1599_p11 = scmp.ne.s32.totalorder %s1962_s30, %s1598_s29  ;;  %p1605_p7 = scmp.lt.u32.totalorder %s1603_s22, %s1598_s29 }
  0x47   : > { %s2265_s21 = scalar_select %p1973_p12, 1, 0 }
  0x48   : > { %p1601_p13 = pnand %p1973_p12, %p1599_p11  ;;  %p1606_p9 = por %p1605_p7, %p1604_p3 }
  0x49   : > { %p1607_p10 = scmp.lt.u32.totalorder %s1598_s29, %s1962_s30 }
  0x4a   : > { %p1602_p0 = pneg %p1601_p13 }
  0x4b   : > { %p1608_p1 = por %p1607_p10, %p1606_p9 }
  0x4d   : > { %p1609_p4 = pnand %p1608_p1, %p1602_p0 }
  0x4f   : > { %1612 = shalt.err (!%p1609_p4)
}
  0x50   : > { %s1613_s9 = scalar_lea.vmem %s1965_s23, 1024  ;;  %s1795_s10 = smov [#allocation5]  }
  0x51   : > { %p1614_p5 = scmp.ne.s32.totalorder %s1965_s23, %s1613_s9  ;;  %s1618_s16 = sshll.u32 %s1795_s10, 4  ;;  %s1619_s16 = int_to_ptr.vmem [resolvable:$false] %s1618_s16 }
  0x52   : > { %s1620_s3 = scalar_lea.vmem %s1619_s16, 2048  ;;  %p1621_p8 = scmp.lt.s32.totalorder %s1965_s23, %s1619_s16 }
  0x53   : > { %p1616_p11 = pnand %p1614_p5, %p1973_p12  ;;  %p1622_p2 = scmp.lt.s32.totalorder %s1620_s3, %s1613_s9 }
  0x55   : > { %p1617_p13 = pneg %p1616_p11  ;;  %p1623_p3 = por %p1622_p2, %p1621_p8 }
  0x57   : > { %p1624_p7 = pnand %p1623_p3, %p1617_p13 }
  0x59   : > { %1627 = shalt.err (!%p1624_p7)
}
  0x5a   : > { %s2266_s22 = smov 4   ;;  %s2267_s29 = smov 64  }
  0x5b   : > { %1502 = dma.hbm_to_vmem [thread:$0]  (!%p1953_p6), %s1962_s30, 1024, %s1965_s23, %s1967_s11, %s2267_s29, %s2267_s29, %s2266_s22  }
  0x5c   : > { %s1796_s17 = smov [#allocation10]   ;;  %s1628_s9 = scalar_lea.hbm %s2223_s5, 1024 }
  0x5d   : > { %s248_s1 = sshll.u32 %s1796_s17, 4  ;;  %p1629_p2 = scmp.ne.s32.totalorder %s2223_s5, %s1628_s9  ;;  %s249_s1 = int_to_ptr.vmem [resolvable:$true] %s248_s1 }
  0x5e   : > { %p2268_p8 = scmp.ne.s32.totalorder %s2259_s18, 0  ;;  %p1635_p1 = scmp.lt.u32.totalorder %s1628_s9, %s2223_s5 }
  0x60   : > { %p2269_p0 = pneg %p2268_p8 }
  0x62   : > { %p1631_p9 = pnand %p1629_p2, %p2269_p0 }
  0x64   : > { %p1632_p10 = pneg %p1631_p9 }
  0x66   : > { %p1637_p4 = pnand %p1635_p1, %p1632_p10 }
  0x68   : > { %1640 = shalt.err (!%p1637_p4)
}
  0x69   : > { %s1641_s30 = scalar_lea.vmem %s249_s1, 1024  ;;  %p2270_p11 = pmov %p2269_p0 }
  0x6a   : > { %p1642_p5 = scmp.ne.s32.totalorder %s249_s1, %s1641_s30  ;;  %p1649_p7 = scmp.lt.s32.totalorder %s249_s1, %s249_s1 }
  0x6b   : > { %p1650_p6 = scmp.lt.s32.totalorder %s1641_s30, %s1641_s30 }
  0x6c   : > { %p1644_p13 = pnand %p1642_p5, %p2270_p11 }
  0x6d   : > { %p1651_p12 = por %p1650_p6, %p1649_p7 }
  0x6e   : > { %p1645_p3 = pneg %p1644_p13 }
  0x70   : > { %p1652_p0 = pnand %p1651_p12, %p1645_p3 }
  0x72   : > { %1655 = shalt.err (!%p1652_p0)
}
  0x73   : > { %1495 = dma.hbm_to_vmem [thread:$0]  (!%p2268_p8), %s2223_s5, 1024, %s249_s1, [#allocation9], %s2267_s29, %s2267_s29, %s2266_s22  }
  0x74   : > { %s2027_s17 = scalar_lea.hbm %s2218_s0, %s1947_s19  ;;  %s269_s18 = scalar_lea.vmem [#allocation2], %s1919_s20 }
  0x75   : > { %s276_s10 = sshll.u32 %s269_s18, 4  ;;  %s2271_s9 = sand.u32 1, %s1786_s26   ;;  %s2030_s10 = int_to_ptr.vmem [resolvable:$true] %s276_s10 }
  0x76   : > { %s2034_s16 = scalar_lea.sflag [#allocation3], %s2271_s9  ;;  %s1656_s3 = scalar_lea.hbm %s2027_s17, 1024 }
  0x77   : > { %p1657_p6 = scmp.ne.s32.totalorder %s2027_s17, %s1656_s3  ;;  %p2272_p12 = scmp.ne.s32.totalorder %s2265_s21, 0 }
  0x78   : > { %s1661_s24 = scalar_lea.hbm %s2218_s0, 2048  ;;  %p1662_p9 = scmp.lt.u32.totalorder %s2027_s17, %s2218_s0 }
  0x79   : > { %p1659_p2 = pnand %p1657_p6, %p2272_p12  ;;  %p1663_p10 = scmp.lt.u32.totalorder %s1661_s24, %s1656_s3 }
  0x7a   : > { %p1665_p4 = scmp.lt.u32.totalorder %s1656_s3, %s2027_s17 }
  0x7b   : > { %p1660_p8 = pneg %p1659_p2  ;;  %p1664_p1 = por %p1663_p10, %p1662_p9 }
  0x7d   : > { %p1666_p5 = por %p1665_p4, %p1664_p1 }
  0x7f   : > { %p1667_p11 = pnand %p1666_p5, %p1660_p8 }
  0x81   : > { %1670 = shalt.err (!%p1667_p11)
}
  0x82   : > { %s1671_s23 = scalar_lea.vmem %s2030_s10, 1024  ;;  %s1797_s18 = smov [#allocation2]  }
  0x83   : > { %p1672_p13 = scmp.ne.s32.totalorder %s2030_s10, %s1671_s23  ;;  %s1676_s9 = sshll.u32 %s1797_s18, 4  ;;  %s1677_s9 = int_to_ptr.vmem [resolvable:$false] %s1676_s9 }
  0x84   : > { %s1678_s1 = scalar_lea.vmem %s1677_s9, 2048  ;;  %p1679_p0 = scmp.lt.s32.totalorder %s2030_s10, %s1677_s9 }
  0x85   : > { %p1674_p3 = pnand %p1672_p13, %p2272_p12  ;;  %p1680_p6 = scmp.lt.s32.totalorder %s1678_s1, %s1671_s23 }
  0x87   : > { %p1675_p7 = pneg %p1674_p3  ;;  %p1681_p2 = por %p1680_p6, %p1679_p0 }
  0x89   : > { %p1682_p9 = pnand %p1681_p2, %p1675_p7 }
  0x8b   : > { %1685 = shalt.err (!%p1682_p9)
}
  0x8c   : > { %p2273_p8 = scmp.ne.s32.totalorder %s2263_s8, 0  ;;  %s2065_s24 = scalar_lea.hbm %s2220_s2, %s1947_s19 }
  0x8d   : > { %s311_s27 = scalar_lea.vmem [#allocation7], %s1919_s20  ;;  %s1686_s23 = scalar_lea.hbm %s2065_s24, 1024 }
  0x8e   : > { %1499 = dma.hbm_to_vmem [thread:$0]  (!%p2273_p8), %s2027_s17, 1024, %s2030_s10, %s2034_s16, %s2267_s29, %s2267_s29, %s2266_s22  }
  0x8f   : > { %s318_s14 = sshll.u32 %s311_s27, 4  ;;  %p1687_p10 = scmp.ne.s32.totalorder %s2065_s24, %s1686_s23  ;;  %s2068_s14 = int_to_ptr.vmem [resolvable:$true] %s318_s14 }
  0x90   : > { %s1691_s10 = scalar_lea.hbm %s2220_s2, 2048  ;;  %p1692_p5 = scmp.lt.u32.totalorder %s2065_s24, %s2220_s2 }
  0x91   : > { %p1689_p1 = pnand %p1687_p10, %p2272_p12  ;;  %p1693_p11 = scmp.lt.u32.totalorder %s1691_s10, %s1686_s23 }
  0x92   : > { %p1695_p3 = scmp.lt.u32.totalorder %s1686_s23, %s2065_s24 }
  0x93   : > { %p1690_p4 = pneg %p1689_p1  ;;  %p1694_p13 = por %p1693_p11, %p1692_p5 }
  0x95   : > { %p1696_p7 = por %p1695_p3, %p1694_p13 }
  0x97   : > { %p1697_p0 = pnand %p1696_p7, %p1690_p4 }
  0x99   : > { %1700 = shalt.err (!%p1697_p0)
}
  0x9a   : > { %s1701_s20 = scalar_lea.vmem %s2068_s14, 1024  ;;  %s1798_s9 = smov [#allocation7]  }
  0x9b   : > { %p1702_p6 = scmp.ne.s32.totalorder %s2068_s14, %s1701_s20  ;;  %s1706_s1 = sshll.u32 %s1798_s9, 4  ;;  %s1707_s1 = int_to_ptr.vmem [resolvable:$false] %s1706_s1 }
  0x9c   : > { %s1708_s3 = scalar_lea.vmem %s1707_s1, 2048  ;;  %p1709_p10 = scmp.lt.s32.totalorder %s2068_s14, %s1707_s1 }
  0x9d   : > { %p1704_p2 = pnand %p1702_p6, %p2272_p12  ;;  %p1710_p1 = scmp.lt.s32.totalorder %s1708_s3, %s1701_s20 }
  0x9f   : > { %p1705_p9 = pneg %p1704_p2  ;;  %p1711_p5 = por %p1710_p1, %p1709_p10 }
  0xa1   : > { %p1712_p11 = pnand %p1711_p5, %p1705_p9 }
  0xa3   : > { %1715 = shalt.err (!%p1712_p11)
}
  0xa4   : > { %1505 = dma.hbm_to_vmem [thread:$0]  (!%p2273_p8), %s2065_s24, 1024, %s2068_s14, %s1967_s11, %s2267_s29, %s2267_s29, %s2266_s22  }
  0xa5   : > { %p2274_p12 = scmp.ne.s32.totalorder %s2258_s15, 0 }
  0xa6   : > { %s2098_s21 = sand.u32 (!%p2274_p12), 1, %s1782_s25   ;;  %p2275_p4 = scmp.ne.s32.totalorder (!%p2274_p12), %s2254_s12, 0 }
  0xa7   : > { %330 = sbr.rel (%p2274_p12) target bundleno = 694 (0x2b6), region = 48  ;;  %s2101_s30 = sshll.u32 (!%p2274_p12), %s2098_s21, 6 }
  0xa8   : > { %s333_s8 = scalar_lea.sflag (!%p2274_p12), [#allocation3], %s2098_s21  ;;  %s2105_s27 = scalar_lea.vmem (!%p2274_p12), [#allocation2], %s2101_s30 }
  0xae   : > { %1761 = dma.done.wait (%p2275_p4), %s333_s8, 1024  }
  0xaf   : > { %1763 = vsyncadd (%p2275_p4), %s333_s8, 4294966272  ;;  %s341_s15 = sand.u32 1, %s1863_s28   ;;  %s2113_s22 = scalar_lea.vmem [#allocation5], %s2101_s30 }
  0xb0   : > { %s342_s11 = scalar_lea.sflag [#allocation6], %s341_s15 }
  0xb1   : > { %1765 = dma.done.wait (%p2275_p4), %s342_s11, 2048  }
  0xb2   : > { %1767 = vsyncadd (%p2275_p4), %s342_s11, 4294965248  ;;  %s2120_s29 = scalar_lea.vmem [#allocation7], %s2101_s30  ;;  %p2276_p8 = scmp.eq.s32.totalorder %s1863_s28, 0 }
  0xb4   : > { %1769 = dma.done.wait (%p2276_p8), [#allocation9], 2048   ;;  %p2277_p13 = pmov %p2276_p8 }
  0xb5   : > { %v1554_v0 = vld [vmem:[#allocation8] sm:$0xff]   ;;  %v1555_v1 = vld [vmem:[#allocation8 + $0x8] sm:$0xff]   ;;  %v1556_v2 = vld [vmem:[#allocation8 + $0x10] sm:$0xff]   ;;  %s2157_s18 = scalar_lea.vmem [#allocation11], %s2101_s30  ;;  %s1212_s10 = sshll.u32 %s1863_s28, 10 }
  0xb6   : > { %1771 = vsyncadd (%p2277_p13), [#allocation9], 4294965248  ;;  %1409 = vmatprep.subr.bf16.mxu0 %v1554_v0  ;;  %v1557_v3 = vld [vmem:[#allocation8 + $0x18] sm:$0xff]   ;;  %v1214_v4 = vld [vmem:[%s2105_s27] sm:$0xff]   ;;  %s998_s17 = sshll.u32 %s2157_s18, 4  ;;  %s2172_s20 = scalar_lea.hbm %s2225_s7, %s1212_s10  ;;  %s2167_s17 = int_to_ptr.vmem [resolvable:$true] %s998_s17 }
  0xb7   : > { %1410 = vmatpush3.bf16.msra.mxu0 %v1554_v0  ;;  %v1246_v5 = vld [vmem:[%s2113_s22] sm:$0xff]   ;;  %v1215_v7 = vunpack.c.l.bf16 %v1214_v4  ;;  %v1216_v8 = vunpack.c.h.bf16 %v1214_v4  ;;  %v1349_v18 = vld [vmem:[%s2105_s27 + $0x8] sm:$0xff]   ;;  %v1350_v23 = vld [vmem:[%s2105_s27 + $0x10] sm:$0xff]   ;;  %s985_s28 = scalar_lea.sflag [#allocation4], %s2098_s21  ;;  %s1716_s9 = scalar_lea.vmem %s2167_s17, 1024 }
  0xb8   : > { %1411 = vmatprep.subr.bf16.mxu0 %v1555_v1  ;;  %v1278_v6 = vld [vmem:[%s2120_s29] sm:$0xff]   ;;  %v1247_v9 = vunpack.c.l.bf16 %v1246_v5  ;;  %v1248_v10 = vunpack.c.h.bf16 %v1246_v5  ;;  %v1356_v19 = vld [vmem:[%s2113_s22 + $0x8] sm:$0xff]   ;;  %v1357_v24 = vld [vmem:[%s2113_s22 + $0x10] sm:$0xff]   ;;  %v1219_v25 = vunpack.c.l.bf16 %v1349_v18  ;;  %v1220_v26 = vunpack.c.h.bf16 %v1349_v18  ;;  %p1717_p3 = scmp.ne.s32.totalorder %s2167_s17, %s1716_s9  ;;  %p2278_p7 = scmp.ne.s32.totalorder %s2255_s13, 0 }
  0xb9   : > { %v1279_v11 = vunpack.c.l.bf16 %v1278_v6  ;;  %v1280_v12 = vunpack.c.h.bf16 %v1278_v6  ;;  %v1558_v15 = vld [vmem:[#allocation8 + $0x20] sm:$0xff]   ;;  %v1559_v20 = vld [vmem:[#allocation8 + $0x28] sm:$0xff]   ;;  %v1251_v27 = vunpack.c.l.bf16 %v1356_v19  ;;  %v1252_v28 = vunpack.c.h.bf16 %v1356_v19  ;;  %v1560_v31 = vld [vmem:[#allocation8 + $0x30] sm:$0xff]   ;;  %s1799_s1 = smov [#allocation11]  }
  0xba   : > { %v472_v13 = vadd.f32 %v1247_v9, %v1215_v7  ;;  %v473_v14 = vadd.f32 %v1248_v10, %v1216_v8  ;;  %v1363_v22 = vld [vmem:[%s2120_s29 + $0x8] sm:$0xff]   ;;  %v1562_v29 = vld [vmem:[#allocation10] sm:$0xff]   ;;  %v1223_v32 = vunpack.c.l.bf16 %v1350_v23  ;;  %v1224_v33 = vunpack.c.h.bf16 %v1350_v23  ;;  %v1364_v36 = vld [vmem:[%s2120_s29 + $0x10] sm:$0xff]   ;;  %p1718_p0 = pnand %p1717_p3, %p2278_p7  ;;  %s1720_s3 = sshll.u32 %s1799_s1, 4  ;;  %s1721_s3 = int_to_ptr.vmem [resolvable:$false] %s1720_s3 }
  0xbb   : > { %1412 = vmatpush3.bf16.msra.mxu0 %v1555_v1  ;;  %v1563_v30 = vld [vmem:[#allocation10 + $0x8] sm:$0xff]   ;;  %1441 = vmatprep.subr.bf16.mxu1 %v1562_v29  ;;  %v1255_v34 = vunpack.c.l.bf16 %v1357_v24  ;;  %v1256_v35 = vunpack.c.h.bf16 %v1357_v24  ;;  %v474_v37 = vadd.f32 %v1251_v27, %v1219_v25  ;;  %v475_v38 = vadd.f32 %v1252_v28, %v1220_v26  ;;  %v1351_v41 = vld [vmem:[%s2105_s27 + $0x18] sm:$0xff]   ;;  %v1564_v42 = vld [vmem:[#allocation10 + $0x10] sm:$0xff]   ;;  %s1722_s30 = scalar_lea.vmem %s1721_s3, 2048  ;;  %p1723_p2 = scmp.lt.s32.totalorder %s2167_s17, %s1721_s3 }
  0xbc   : > { %1413 = vmatprep.subr.bf16.mxu0 %v1556_v2  ;;  %v520_v16 = vadd.f32 %v1279_v11, %v472_v13  ;;  %v521_v17 = vadd.f32 %v1280_v12, %v473_v14  ;;  %1442 = vmatpush3.bf16.msra.mxu1 %v1562_v29  ;;  %v1283_v39 = vunpack.c.l.bf16 %v1363_v22  ;;  %v1284_v40 = vunpack.c.h.bf16 %v1363_v22  ;;  %v1358_v43 = vld [vmem:[%s2113_s22 + $0x18] sm:$0xff]   ;;  %v1352_v48 = vld [vmem:[%s2105_s27 + $0x20] sm:$0xff]   ;;  %v1353_v12 = vld [vmem:[%s2105_s27 + $0x28] sm:$0xff]   ;;  %p1719_p6 = pneg %p1718_p0  ;;  %p1724_p9 = scmp.lt.s32.totalorder %s1722_s30, %s1716_s9 }
  0xbd   : > { %1443 = vmatprep.subr.bf16.mxu1 %v1563_v30  ;;  %v476_v44 = vadd.f32 %v1255_v34, %v1223_v32  ;;  %v477_v45 = vadd.f32 %v1256_v35, %v1224_v33  ;;  %v1287_v46 = vunpack.c.l.bf16 %v1364_v36  ;;  %v1288_v47 = vunpack.c.h.bf16 %v1364_v36  ;;  %v1359_v49 = vld [vmem:[%s2113_s22 + $0x20] sm:$0xff]   ;;  %v1561_v50 = vld [vmem:[#allocation8 + $0x38] sm:$0xff]   ;;  %v1360_v13 = vld [vmem:[%s2113_s22 + $0x28] sm:$0xff]  }
  0xbe   : > { %v536_v21 = vpack.c.bf16 %v521_v17, %v520_v16  ;;  %v522_v51 = vadd.f32 %v1283_v39, %v474_v37  ;;  %v523_v52 = vadd.f32 %v1284_v40, %v475_v38  ;;  %v1565_v53 = vld [vmem:[#allocation10 + $0x18] sm:$0xff]   ;;  %v1227_v54 = vunpack.c.l.bf16 %v1351_v41  ;;  %v1366_v1 = vld [vmem:[%s2120_s29 + $0x20] sm:$0xff]   ;;  %v1361_v16 = vld [vmem:[%s2113_s22 + $0x30] sm:$0xff]   ;;  %p1725_p10 = por %p1724_p9, %p1723_p2 }
  0xbf   : > { %1414 = vmatpush3.bf16.msra.mxu0 %v1556_v2  ;;  %v1228_v55 = vunpack.c.h.bf16 %v1351_v41  ;;  %v1259_v56 = vunpack.c.l.bf16 %v1358_v43  ;;  %v1260_v57 = vunpack.c.h.bf16 %v1358_v43  ;;  %v1365_v58 = vld [vmem:[%s2120_s29 + $0x18] sm:$0xff]   ;;  %v1231_v59 = vunpack.c.l.bf16 %v1352_v48  ;;  %v1567_v17 = vld [vmem:[#allocation10 + $0x28] sm:$0xff]  }
  0xc0   : > { %1415 = vmatprep.subr.bf16.mxu0 %v1557_v3  ;;  %1425 = vmatprep.mubr.bf16.mxu0 %v536_v21  ;;  %v1232_v60 = vunpack.c.h.bf16 %v1352_v48  ;;  %v1263_v61 = vunpack.c.l.bf16 %v1359_v49  ;;  %v1264_v62 = vunpack.c.h.bf16 %v1359_v49  ;;  %v524_v63 = vadd.f32 %v1287_v46, %v476_v44  ;;  %v1367_v26 = vld [vmem:[%s2120_s29 + $0x28] sm:$0xff]   ;;  %v1362_v43 = vld [vmem:[%s2113_s22 + $0x38] sm:$0xff]   ;;  %p1726_p1 = pnand %p1725_p10, %p1719_p6 }
  0xc1   : > { %1444 = vmatpush3.bf16.msra.mxu1 %v1563_v30  ;;  %v525_v0 = vadd.f32 %v1288_v47, %v477_v45  ;;  %v537_v2 = vpack.c.bf16 %v523_v52, %v522_v51  ;;  %v478_v4 = vadd.f32 %v1259_v56, %v1227_v54  ;;  %v479_v5 = vadd.f32 %v1260_v57, %v1228_v55  ;;  %v1369_v52 = vld [vmem:[%s2120_s29 + $0x38] sm:$0xff]  }
  0xc2   : > { %1445 = vmatprep.subr.bf16.mxu1 %v1564_v42  ;;  %v1291_v6 = vunpack.c.l.bf16 %v1365_v58  ;;  %v1292_v7 = vunpack.c.h.bf16 %v1365_v58  ;;  %v480_v8 = vadd.f32 %v1263_v61, %v1231_v59  ;;  %v481_v9 = vadd.f32 %v1264_v62, %v1232_v60  ;;  %v1568_v62 = vld [vmem:[#allocation10 + $0x30] sm:$0xff]  }
  0xc3   : > { %1416 = vmatpush3.bf16.msra.mxu0 %v1557_v3  ;;  %v1566_v3 = vld [vmem:[#allocation10 + $0x20] sm:$0xff]   ;;  %v1295_v10 = vunpack.c.l.bf16 %v1366_v1  ;;  %v1296_v11 = vunpack.c.h.bf16 %v1366_v1  ;;  %v538_v14 = vpack.c.bf16 %v525_v0, %v524_v63  ;;  %v1235_v18 = vunpack.c.l.bf16 %v1353_v12  ;;  %v1569_v63 = vld [vmem:[#allocation10 + $0x38] sm:$0xff]  }
  0xc4   : > { %1417 = vmatprep.subr.bf16.mxu0 %v1558_v15  ;;  %v1236_v19 = vunpack.c.h.bf16 %v1353_v12  ;;  %v1268_v21 = vunpack.c.h.bf16 %v1360_v13  ;;  %v526_v22 = vadd.f32 %v1291_v6, %v478_v4  ;;  %v527_v23 = vadd.f32 %v1292_v7, %v479_v5  ;;  %v1154_v0 = vld [vmem:[%s2222_s4] ss:$0 sm:$0xff] }
  0xc5   : > { %1446 = vmatpush3.bf16.msra.mxu1 %v1564_v42  ;;  %v528_v24 = vadd.f32 %v1295_v10, %v480_v8  ;;  %v529_v25 = vadd.f32 %v1296_v11, %v481_v9  ;;  %v1271_v29 = vunpack.c.l.bf16 %v1361_v16  ;;  %v1272_v30 = vunpack.c.h.bf16 %v1361_v16  ;;  %v1355_v42 = vld [vmem:[%s2105_s27 + $0x38] sm:$0xff]  }
  0xc6   : > { %1447 = vmatprep.subr.bf16.mxu1 %v1565_v53  ;;  %v483_v33 = vadd.f32 %v1268_v21, %v1236_v19  ;;  %v1299_v34 = vunpack.c.l.bf16 %v1367_v26  ;;  %v1300_v35 = vunpack.c.h.bf16 %v1367_v26  ;;  %v539_v36 = vpack.c.bf16 %v527_v23, %v526_v22 }
  0xc7   : > { %1418 = vmatpush3.bf16.msra.mxu0 %v1558_v15  ;;  %v1354_v15 = vld [vmem:[%s2105_s27 + $0x30] sm:$0xff]   ;;  %v540_v37 = vpack.c.bf16 %v529_v25, %v528_v24  ;;  %v1243_v46 = vunpack.c.l.bf16 %v1355_v42  ;;  %v1244_v47 = vunpack.c.h.bf16 %v1355_v42  ;;  %v1275_v48 = vunpack.c.l.bf16 %v1362_v43 }
  0xc8   : > { %1419 = vmatprep.subr.bf16.mxu0 %v1559_v20  ;;  %v1239_v27 = vunpack.c.l.bf16 %v1354_v15  ;;  %v1240_v28 = vunpack.c.h.bf16 %v1354_v15  ;;  %v531_v45 = vadd.f32 %v1300_v35, %v483_v33  ;;  %v1276_v49 = vunpack.c.h.bf16 %v1362_v43 }
  0xc9   : > { %1448 = vmatpush3.bf16.msra.mxu1 %v1565_v53  ;;  %v486_v54 = vadd.f32 %v1275_v48, %v1243_v46  ;;  %v1307_v56 = vunpack.c.l.bf16 %v1369_v52  ;;  %v1308_v57 = vunpack.c.h.bf16 %v1369_v52 }
  0xca   : > { %1449 = vmatprep.subr.bf16.mxu1 %v1566_v3  ;;  %v484_v38 = vadd.f32 %v1271_v29, %v1239_v27  ;;  %v485_v39 = vadd.f32 %v1272_v30, %v1240_v28  ;;  %v487_v55 = vadd.f32 %v1276_v49, %v1244_v47 }
  0xcb   : > { %1420 = vmatpush3.bf16.msra.mxu0 %v1559_v20  ;;  %v1267_v20 = vunpack.c.l.bf16 %v1360_v13  ;;  %v534_v59 = vadd.f32 %v1307_v56, %v486_v54 }
  0xcc   : > { %1421 = vmatprep.subr.bf16.mxu0 %v1560_v31  ;;  %v535_v60 = vadd.f32 %v1308_v57, %v487_v55 }
  0xcd   : > { %1450 = vmatpush3.bf16.msra.mxu1 %v1566_v3  ;;  %v482_v32 = vadd.f32 %v1267_v20, %v1235_v18 }
  0xce   : > { %1451 = vmatprep.subr.bf16.mxu1 %v1567_v17  ;;  %v543_v61 = vpack.c.bf16 %v535_v60, %v534_v59 }
  0xcf   : > { %1422 = vmatpush3.bf16.msra.mxu0 %v1560_v31  ;;  %v1368_v31 = vld [vmem:[%s2120_s29 + $0x30] sm:$0xff]   ;;  %v530_v44 = vadd.f32 %v1299_v34, %v482_v32 }
  0xd0   : > { %1423 = vmatprep.subr.bf16.mxu0 %v1561_v50  ;;  %v1303_v40 = vunpack.c.l.bf16 %v1368_v31  ;;  %v1304_v41 = vunpack.c.h.bf16 %v1368_v31 }
  0xd1   : > { %1452 = vmatpush3.bf16.msra.mxu1 %v1567_v17  ;;  %v541_v53 = vpack.c.bf16 %v531_v45, %v530_v44 }
  0xd2   : > { %v533_v51 = vadd.f32 %v1304_v41, %v485_v39  ;;  %1453 = vmatprep.subr.bf16.mxu1 %v1568_v62 }
  0xd3   : > { %1424 = vmatpush3.bf16.msra.mxu0 %v1561_v50  ;;  %v532_v50 = vadd.f32 %v1303_v40, %v484_v38 }
  0xd5   : > { %v542_v58 = vpack.c.bf16 %v533_v51, %v532_v50  ;;  %1454 = vmatpush3.bf16.msra.mxu1 %v1568_v62 }
  0xd6   : > { %1426 = vmatmul.mubr.bf16.vlgmr.msra.gmra.mrb[0].mxu0 %v537_v2  ;;  %1455 = vmatprep.subr.bf16.mxu1 %v1569_v63 }
  0xd7   : > { %1429 = vmatprep.mubr.bf16.mxu0 %v538_v14 }
  0xd9   : > { %1456 = vmatpush3.bf16.msra.mxu1 %v1569_v63 }
  0xde   : > { %1430 = vmatmul.mubr.bf16.gmra.mrb[4].mxu0 %v539_v36 }
  0xdf   : > { %1433 = vmatprep.mubr.bf16.mxu0 %v540_v37 }
  0xe6   : > { %1434 = vmatmul.mubr.bf16.gmra.mrb[8].mxu0 %v541_v53 }
  0xe7   : > { %1437 = vmatprep.mubr.bf16.mxu0 %v542_v58  ;;  %v1163_v58 = vld [vmem:[%s2224_s6] ss:$0 sm:$0xff] }
  0xee   : > { %1438 = vmatmul.mubr.bf16.gmra.mrb[12].mxu0 %v543_v61 }
 0x1a9   : > { %v1427_v1 = vpop.f32.mrb[0].mxu0 }
 0x1aa   : > { %v658_v2 = vadd.f32 %v1427_v1, %v1154_v0  ;;  %v649_v3 = vpop.f32.mrb[1].mxu0 }
 0x1ab   : > { %v650_v4 = vadd.f32 %v1154_v0, %v649_v3  ;;  %v1428_v5 = vpop.f32.mrb[2].mxu0 }
 0x1ac   : > { %v661_v6 = vadd.f32 %v1428_v5, %v1154_v0  ;;  %v652_v7 = vpop.f32.mrb[3].mxu0  ;;  %v714_v9 = vmax.f32 %v658_v2, 0.0 }
 0x1ad   : > { %v653_v8 = vadd.f32 %v1154_v0, %v652_v7  ;;  %v712_v11 = vmax.f32 %v650_v4, 0.0 }
 0x1ae   : > { %v715_v10 = vmax.f32 %v661_v6, 0.0 }
 0x1af   : > { %v713_v12 = vmax.f32 %v653_v8, 0.0 }
 0x1b0   : > { %v729_v13 = vpack.c.bf16 %v715_v10, %v714_v9 }
 0x1b1   : > { %v1431_v14 = vpop.f32.mrb[4].mxu0  ;;  %v728_v15 = vpack.c.bf16 %v713_v12, %v712_v11 }
 0x1b2   : > { %v674_v16 = vadd.f32 %v1431_v14, %v1154_v0  ;;  %v665_v17 = vpop.f32.mrb[5].mxu0 }
 0x1b3   : > { %v666_v18 = vadd.f32 %v1154_v0, %v665_v17  ;;  %v1432_v19 = vpop.f32.mrb[6].mxu0  ;;  %1457 = vmatprep.mubr.bf16.mxu1 %v728_v15 }
 0x1b4   : > { %v677_v20 = vadd.f32 %v1432_v19, %v1154_v0  ;;  %v668_v21 = vpop.f32.mrb[7].mxu0  ;;  %1458 = vmatmul.mubr.bf16.vlgmr.msra.gmra.mrb[0].mxu1 %v729_v13  ;;  %v718_v23 = vmax.f32 %v674_v16, 0.0 }
 0x1b5   : > { %v669_v22 = vadd.f32 %v1154_v0, %v668_v21  ;;  %v716_v25 = vmax.f32 %v666_v18, 0.0 }
 0x1b6   : > { %v719_v24 = vmax.f32 %v677_v20, 0.0 }
 0x1b7   : > { %v717_v26 = vmax.f32 %v669_v22, 0.0 }
 0x1b8   : > { %v731_v27 = vpack.c.bf16 %v719_v24, %v718_v23 }
 0x1b9   : > { %v730_v28 = vpack.c.bf16 %v717_v26, %v716_v25  ;;  %v1435_v29 = vpop.f32.mrb[8].mxu0 }
 0x1ba   : > { %v690_v30 = vadd.f32 %v1435_v29, %v1154_v0  ;;  %v681_v31 = vpop.f32.mrb[9].mxu0 }
 0x1bb   : > { %v682_v32 = vadd.f32 %v1154_v0, %v681_v31  ;;  %v1436_v33 = vpop.f32.mrb[10].mxu0  ;;  %1461 = vmatprep.mubr.bf16.mxu1 %v730_v28 }
 0x1bc   : > { %v693_v34 = vadd.f32 %v1436_v33, %v1154_v0  ;;  %v684_v35 = vpop.f32.mrb[11].mxu0  ;;  %1462 = vmatmul.mubr.bf16.gmra.mrb[4].mxu1 %v731_v27  ;;  %v722_v37 = vmax.f32 %v690_v30, 0.0 }
 0x1bd   : > { %v685_v36 = vadd.f32 %v1154_v0, %v684_v35  ;;  %v720_v39 = vmax.f32 %v682_v32, 0.0 }
 0x1be   : > { %v723_v38 = vmax.f32 %v693_v34, 0.0 }
 0x1bf   : > { %v721_v40 = vmax.f32 %v685_v36, 0.0 }
 0x1c0   : > { %v733_v41 = vpack.c.bf16 %v723_v38, %v722_v37 }
 0x1c1   : > { %v732_v42 = vpack.c.bf16 %v721_v40, %v720_v39  ;;  %v1439_v43 = vpop.f32.mrb[12].mxu0 }
 0x1c2   : > { %v706_v44 = vadd.f32 %v1439_v43, %v1154_v0  ;;  %v697_v45 = vpop.f32.mrb[13].mxu0 }
 0x1c3   : > { %v698_v46 = vadd.f32 %v1154_v0, %v697_v45  ;;  %v1440_v47 = vpop.f32.mrb[14].mxu0  ;;  %1465 = vmatprep.mubr.bf16.mxu1 %v732_v42 }
 0x1c4   : > { %v709_v48 = vadd.f32 %v1440_v47, %v1154_v0  ;;  %v700_v49 = vpop.f32.mrb[15].mxu0  ;;  %1466 = vmatmul.mubr.bf16.gmra.mrb[8].mxu1 %v733_v41  ;;  %v726_v51 = vmax.f32 %v706_v44, 0.0 }
 0x1c5   : > { %v701_v50 = vadd.f32 %v1154_v0, %v700_v49  ;;  %v724_v53 = vmax.f32 %v698_v46, 0.0 }
 0x1c6   : > { %v727_v52 = vmax.f32 %v709_v48, 0.0 }
 0x1c7   : > { %v725_v54 = vmax.f32 %v701_v50, 0.0 }
 0x1c8   : > { %v735_v55 = vpack.c.bf16 %v727_v52, %v726_v51 }
 0x1c9   : > { %v734_v56 = vpack.c.bf16 %v725_v54, %v724_v53 }
 0x1cb   : > { %1469 = vmatprep.mubr.bf16.mxu1 %v734_v56 }
 0x1cc   : > { %1470 = vmatmul.mubr.bf16.gmra.mrb[12].mxu1 %v735_v55 }
 0x287   : > { %v1459_v57 = vpop.f32.mrb[0].mxu1 }
 0x288   : > { %v841_v59 = vpop.f32.mrb[1].mxu1  ;;  %v850_v61 = vadd.f32 %v1459_v57, %v1163_v58 }
 0x289   : > { %v1460_v60 = vpop.f32.mrb[2].mxu1  ;;  %v842_v0 = vadd.f32 %v1163_v58, %v841_v59 }
 0x28a   : > { %v853_v62 = vadd.f32 %v1460_v60, %v1163_v58  ;;  %v844_v63 = vpop.f32.mrb[3].mxu1 }
 0x28b   : > { %v845_v1 = vadd.f32 %v1163_v58, %v844_v63 }
 0x28c   : > { %v1317_v2 = vpack.c.bf16 %v853_v62, %v850_v61 }
 0x28d   : > { %v1312_v3 = vpack.c.bf16 %v845_v1, %v842_v0 }
 0x28e   : > { %1370 = vst [vmem:[%s2157_s18 + $0x8] sm:$0xff] %v1317_v2  }
 0x28f   : > { %1313 = vst [vmem:[%s2157_s18] sm:$0xff] %v1312_v3   ;;  %v1463_v4 = vpop.f32.mrb[4].mxu1 }
 0x290   : > { %v857_v5 = vpop.f32.mrb[5].mxu1  ;;  %v866_v7 = vadd.f32 %v1463_v4, %v1163_v58 }
 0x291   : > { %v1464_v6 = vpop.f32.mrb[6].mxu1  ;;  %v858_v10 = vadd.f32 %v1163_v58, %v857_v5 }
 0x292   : > { %v869_v8 = vadd.f32 %v1464_v6, %v1163_v58  ;;  %v860_v9 = vpop.f32.mrb[7].mxu1 }
 0x293   : > { %v861_v11 = vadd.f32 %v1163_v58, %v860_v9 }
 0x294   : > { %v1327_v12 = vpack.c.bf16 %v869_v8, %v866_v7 }
 0x295   : > { %v1322_v13 = vpack.c.bf16 %v861_v11, %v858_v10 }
 0x296   : > { %1372 = vst [vmem:[%s2157_s18 + $0x18] sm:$0xff] %v1327_v12  }
 0x297   : > { %1371 = vst [vmem:[%s2157_s18 + $0x10] sm:$0xff] %v1322_v13   ;;  %v1467_v14 = vpop.f32.mrb[8].mxu1 }
 0x298   : > { %v873_v15 = vpop.f32.mrb[9].mxu1  ;;  %v882_v17 = vadd.f32 %v1467_v14, %v1163_v58 }
 0x299   : > { %v1468_v16 = vpop.f32.mrb[10].mxu1  ;;  %v874_v20 = vadd.f32 %v1163_v58, %v873_v15 }
 0x29a   : > { %v885_v18 = vadd.f32 %v1468_v16, %v1163_v58  ;;  %v876_v19 = vpop.f32.mrb[11].mxu1 }
 0x29b   : > { %v877_v21 = vadd.f32 %v1163_v58, %v876_v19 }
 0x29c   : > { %v1337_v22 = vpack.c.bf16 %v885_v18, %v882_v17 }
 0x29d   : > { %v1332_v23 = vpack.c.bf16 %v877_v21, %v874_v20 }
 0x29e   : > { %1374 = vst [vmem:[%s2157_s18 + $0x28] sm:$0xff] %v1337_v22  }
 0x29f   : > { %1373 = vst [vmem:[%s2157_s18 + $0x20] sm:$0xff] %v1332_v23   ;;  %v1471_v24 = vpop.f32.mrb[12].mxu1 }
 0x2a0   : > { %v889_v25 = vpop.f32.mrb[13].mxu1  ;;  %v898_v27 = vadd.f32 %v1471_v24, %v1163_v58 }
 0x2a1   : > { %v1472_v26 = vpop.f32.mrb[14].mxu1  ;;  %v890_v30 = vadd.f32 %v1163_v58, %v889_v25 }
 0x2a2   : > { %v901_v28 = vadd.f32 %v1472_v26, %v1163_v58  ;;  %v892_v29 = vpop.f32.mrb[15].mxu1 }
 0x2a3   : > { %v893_v31 = vadd.f32 %v1163_v58, %v892_v29 }
 0x2a4   : > { %v1347_v32 = vpack.c.bf16 %v901_v28, %v898_v27 }
 0x2a5   : > { %v1342_v33 = vpack.c.bf16 %v893_v31, %v890_v30 }
 0x2a6   : > { %1376 = vst [vmem:[%s2157_s18 + $0x38] sm:$0xff] %v1347_v32  }
 0x2a7   : > { %1375 = vst [vmem:[%s2157_s18 + $0x30] sm:$0xff] %v1342_v33  }
 0x2a8   : > { %1729 = shalt.err (!%p1726_p1)
}
 0x2a9   : > { %s1730_s8 = scalar_lea.hbm %s2172_s20, 1024  ;;  %s1734_s11 = scalar_lea.hbm %s2225_s7, 2048 }
 0x2aa   : > { %p1731_p5 = scmp.ne.s32.totalorder %s2172_s20, %s1730_s8  ;;  %p1735_p4 = scmp.lt.u32.totalorder %s2172_s20, %s2225_s7 }
 0x2ab   : > { %p1736_p8 = scmp.lt.u32.totalorder %s1734_s11, %s1730_s8  ;;  %p1738_p3 = scmp.lt.u32.totalorder %s1730_s8, %s2172_s20 }
 0x2ac   : > { %p1732_p11 = pnand %p1731_p5, %p2278_p7 }
 0x2ad   : > { %p1737_p13 = por %p1736_p8, %p1735_p4 }
 0x2ae   : > { %p1733_p12 = pneg %p1732_p11 }
 0x2af   : > { %p1739_p0 = por %p1738_p3, %p1737_p13 }
 0x2b1   : > { %p1740_p6 = pnand %p1739_p0, %p1733_p12 }
 0x2b3   : > { %1743 = shalt.err (!%p1740_p6)
}
 0x2b4   : > { %s1800_s12 = smov 64   ;;  %s1801_s24 = smov 4  }
 0x2b5   : > { %1487 = dma.vmem_to_hbm [thread:$0]  (%p2278_p7), %s2167_s17, 1024, %s2172_s20, %s985_s28, %s1800_s12, %s1800_s12, %s1801_s24  }
 0x2b6 PF: > { %s2279_s14 = sld [smem:[#allocation16_spill]]  ;;  %s2280_s23 = sld [smem:[#allocation20_spill]] }
 0x2b7   : > { %s2281_s18 = sld [smem:[#allocation17_spill]] }
 0x2bc   : > { %s1013_s10 = sand.u32 1, %s2279_s14   ;;  %p2282_p2 = scmp.ne.s32.totalorder %s2280_s23, 0 }
 0x2bd   : > { %p2283_p9 = scmp.ge.s32.totalorder %s2281_s18, 2  ;;  %s1014_s16 = scalar_lea.sflag [#allocation4], %s1013_s10 }
 0x2bf   : > { %p1507_p10 = pnand %p2283_p9, %p2282_p2 }
 0x2c1   : > { %1773 = dma.done.wait (!%p1507_p10), %s1014_s16, 1024  }
 0x2c2   : > { %1775 = vsyncadd (!%p1507_p10), %s1014_s16, 4294966272  ;;  %s2284_s27 = sld [smem:[#allocation18_spill]]  ;;  %s2285_s19 = sld [smem:[#allocation19_spill]] }
 0x2c3   : > { %s2286_s24 = smov %s1782_s25  ;;  %s2287_s25 = smov %s1786_s26 }
 0x2c8   : > { %p24_p1 = scmp.ge.s32.totalorder %s2284_s27, 4   ;;  %s2288_s26 = smov %s2285_s19 }
 0x2ca   :  { %26 = sbr.rel (!%p24_p1) target bundleno = 11 (0xb), region = 125 }
 0x2d1   :  { %1019 = vsyncpa [#allocation3], 1 }
 0x2d2   :  { %1021 = vsyncpa [#allocation3 + $0x1], 1 }
 0x2d3   :  { %1022 = vsyncpa [#allocation6], 1 }
 0x2d4   :  { %1024 = vsyncpa [#allocation6 + $0x1], 1 }
 0x2d5   :  { %1025 = vsyncpa [#allocation9], 1 }
 0x2d6   :  { %1026 = vsyncpa [#allocation4], 1 }
 0x2d7   :  { %1028 = vsyncpa [#allocation4 + $0x1], 1 }

</bundles_post_ra>
